<compile_context>
chip_gen: v5e
topology: v5e:2x2
jax: 0.10.0
libtpu: 0.0.40
codegen_flags: <defaults>
</compile_context>

<pallas_src>
import functools

import jax
import jax.numpy as jnp
from jax.experimental import pallas as pl
from jax.experimental.pallas import tpu as pltpu


# ---------------------------------------------------------------------------
# Fused kernel: all GraphConv layers in one body, everything resident in VMEM.
# ---------------------------------------------------------------------------
def _fused_gcn_kernel(a_ref, x_ref, *refs, n_layers, activation):
    o_ref = refs[-1]
    wb_refs = refs[:-1]  # interleaved (w1, b1, w2, b2, ...)

    a = a_ref[...]       # (Np, Np) bf16, degree-normalized adjacency (lane-dense: Np % 128 == 0)
    h = x_ref[...]       # (Np, Fh) bf16, node features (lane-padded)

    for layer in range(n_layers):
        w_ref = wb_refs[2 * layer]
        b_ref = wb_refs[2 * layer + 1]

        # Feature transform first, then N^2 aggregation over the (possibly narrower)
        # output width; equal to (A @ H) @ W by associativity.  f32 accumulation on MXU.
        xw = jnp.dot(h, w_ref[...], preferred_element_type=jnp.float32)
        hn = jnp.dot(a, xw.astype(jnp.bfloat16), preferred_element_type=jnp.float32)
        hn = hn + b_ref[...]  # bias broadcast, f32 on VPU

        if layer < n_layers - 1 and activation == "elu":
            # ELU (alpha=1); exp clamped so the unselected branch never produces inf.
            hn = jnp.where(hn > 0.0, hn, jnp.exp(jnp.minimum(hn, 0.0)) - 1.0)
            h = hn.astype(jnp.bfloat16)  # bf16 for the next MXU pass
        else:
            h = hn

    o_ref[...] = h.astype(o_ref.dtype)


# ---------------------------------------------------------------------------
# One-time preprocessing (hoisted out of the per-call forward).
# ---------------------------------------------------------------------------
def normalize_adjacency(adj):
    """Symmetric ('both') normalization: D_in^{-1/2} A D_out^{-1/2}."""
    deg_in = jnp.clip(adj.sum(axis=1), 1.0, None)
    deg_out = jnp.clip(adj.sum(axis=0), 1.0, None)
    return (deg_in[:, None] ** -0.5) * adj * (deg_out[None, :] ** -0.5)


def init_graph_conv_params(key, f_in, f_out):
    """Glorot-uniform weight + zero bias (DGL GraphConv default)."""
    limit = (6.0 / (f_in + f_out)) ** 0.5
    w = jax.random.uniform(key, (f_in, f_out), jnp.float32, -limit, limit)
    b = jnp.zeros((f_out,), jnp.float32)
    return w, b


def _round_up(x, m):
    return -(-x // m) * m


def _pad2d(x, rows, cols):
    r, c = x.shape
    return jnp.pad(x, ((0, rows - r), (0, cols - c)))


def prepare_gcn_inputs(adj, x, params):
    """One-time prepare: normalize A, pad everything to TPU-friendly shapes, cast to bf16.

    Do this ONCE per graph/weights; the forward pass then only runs the pallas_call.
    Padded W columns / bias lanes are zero, so padded feature lanes stay exactly zero
    through ELU on every layer; padded node rows/cols of A are zero, so padded rows never
    contribute to real rows and are sliced away at the end.
    """
    n = adj.shape[0]
    n_layers = len(params)
    f_out = params[-1][0].shape[1]

    # Lane/MXU-dense padding: node dim to 128, hidden feature width to 128, output width
    # padded independently of the hidden width.
    n_pad = _round_up(n, 128)
    hidden_dims = [x.shape[1]] + [w.shape[0] for w, _ in params]
    hidden_dims += [w.shape[1] for w, _ in params[:-1]]
    fp_h = _round_up(max(hidden_dims), 128)
    fp_o = _round_up(f_out, 128)

    a_norm = normalize_adjacency(adj)
    a_p = _pad2d(a_norm, n_pad, n_pad).astype(jnp.bfloat16)
    x_p = _pad2d(x, n_pad, fp_h).astype(jnp.bfloat16)

    flat_wb = []
    for idx, (w, b) in enumerate(params):
        fo = fp_h if idx < n_layers - 1 else fp_o
        flat_wb.append(_pad2d(w, fp_h, fo).astype(jnp.bfloat16))
        flat_wb.append(jnp.pad(b, (0, fo - b.shape[0])).reshape(1, fo).astype(jnp.float32))

    operands = tuple(jax.device_put(t) for t in (a_p, x_p, *flat_wb))
    return {
        "operands": operands,
        "n": n,
        "f_out": f_out,
        "n_pad": n_pad,
        "fp_h": fp_h,
        "fp_o": fp_o,
        "n_layers": n_layers,
    }


# ---------------------------------------------------------------------------
# Per-generation VMEM budgeting.
# ---------------------------------------------------------------------------
def _pick_vmem_limit_bytes():
    """~96 MiB on 128-MiB-VMEM chips (v5e/v6e), ~48 MiB on v7x (64 MiB physical)."""
    fallback = 48 * 1024 * 1024  # safe on every generation
    try:
        cap = int(pltpu.get_tpu_info().vmem_capacity_bytes)
        return int(min(cap - (16 << 20), (cap * 3) // 4))
    except Exception:
        return fallback


def _estimated_vmem_bytes(n_pad, fp_h, fp_o, n_layers):
    a = n_pad * n_pad * 2                     # resident bf16 A
    x = n_pad * fp_h * 2                      # bf16 features
    w = (n_layers - 1) * fp_h * fp_h * 2 + fp_h * fp_o * 2
    b = (n_layers - 1) * fp_h * 4 + fp_o * 4
    out = n_pad * fp_o * 4                    # f32 output
    inter = 3 * n_pad * fp_h * 4              # xw / hn / h temporaries (f32)
    return int(1.15 * (a + x + w + b + out + inter))


# ---------------------------------------------------------------------------
# Forward pass: fused single pallas_call on pre-prepared operands.
# ---------------------------------------------------------------------------
def basic_graph_model_forward(prepared, nonlinearity="elu"):
    operands = prepared["operands"]
    n, f_out = prepared["n"], prepared["f_out"]
    n_pad, fp_h, fp_o = prepared["n_pad"], prepared["fp_h"], prepared["fp_o"]
    n_layers = prepared["n_layers"]

    vmem_limit = _pick_vmem_limit_bytes()
    need = _estimated_vmem_bytes(n_pad, fp_h, fp_o, n_layers)
    if need > vmem_limit:
        # TODO(synk): switch to the streaming-A path (A tiles >=512 wide, Buffered(2-3),
        # H/XW persistent in VMEM scratch, layer/row/k grid) above the resident cutover.
        raise NotImplementedError(
            f"resident-A footprint ~{need >> 20} MiB exceeds VMEM budget "
            f"{vmem_limit >> 20} MiB; streaming path not implemented"
        )

    # Advisory cost estimate (padded shapes).
    flops = 0
    for layer in range(n_layers):
        fo = fp_h if layer < n_layers - 1 else fp_o
        flops += 2 * n_pad * fp_h * fo          # X @ W
        flops += 2 * n_pad * n_pad * fo         # A @ (XW)
    transcendentals = (n_layers - 1) * n_pad * fp_h
    bytes_accessed = sum(int(t.size) * t.dtype.itemsize for t in operands) + n_pad * fp_o * 4

    kernel = functools.partial(
        _fused_gcn_kernel, n_layers=n_layers, activation=nonlinearity
    )

    out = pl.pallas_call(
        kernel,
        out_shape=jax.ShapeDtypeStruct((n_pad, fp_o), jnp.float32),
        in_specs=[pl.BlockSpec(t.shape, lambda: (0, 0)) for t in operands],
        out_specs=pl.BlockSpec((n_pad, fp_o), lambda: (0, 0)),
        compiler_params=pltpu.CompilerParams(vmem_limit_bytes=vmem_limit),
        cost_estimate=pl.CostEstimate(
            flops=int(flops),
            transcendentals=int(transcendentals),
            bytes_accessed=int(bytes_accessed),
        ),
    )(*operands)

    return out[:n, :f_out]


# ---------------------------------------------------------------------------
# Reference (plain JAX, same bf16 operand / f32 accumulation scheme) for a self-check.
# ---------------------------------------------------------------------------
def _reference_forward(a_norm, x, params, nonlinearity="elu"):
    a = a_norm.astype(jnp.bfloat16)
    h = x.astype(jnp.bfloat16)
    for i, (w, b) in enumerate(params):
        xw = jnp.dot(h, w.astype(jnp.bfloat16), preferred_element_type=jnp.float32)
        hn = jnp.dot(a, xw.astype(jnp.bfloat16), preferred_element_type=jnp.float32) + b
        if i < len(params) - 1 and nonlinearity == "elu":
            hn = jnp.where(hn > 0.0, hn, jnp.exp(jnp.minimum(hn, 0.0)) - 1.0)
            h = hn.astype(jnp.bfloat16)
        else:
            h = hn
    return h


if __name__ == "__main__":
    # Small shapes consistent with the module: N nodes,
    # input_size -> hidden_size (x n_layers) -> output_size.
    N = 64
    INPUT_SIZE = 32
    HIDDEN_SIZE = 32
    OUTPUT_SIZE = 16
    N_LAYERS = 2  # => 3 GraphConv layers total, as in __init__

    root = jax.random.PRNGKey(0)
    k_adj, k_x, k_params = jax.random.split(root, 3)

    # Deterministic synthetic graph: sparse random edges + self-loops (no zero degrees).
    adj = jax.random.bernoulli(k_adj, 0.1, (N, N)).astype(jnp.float32)
    adj = jnp.maximum(adj, jnp.eye(N, dtype=jnp.float32))

    # Node features.
    x = jax.random.normal(k_x, (N, INPUT_SIZE), jnp.float32)

    # Parameters: [in->hidden] + (n_layers-1) x [hidden->hidden] + [hidden->out].
    layer_dims = [(INPUT_SIZE, HIDDEN_SIZE)]
    layer_dims += [(HIDDEN_SIZE, HIDDEN_SIZE)] * (N_LAYERS - 1)
    layer_dims += [(HIDDEN_SIZE, OUTPUT_SIZE)]
    keys = jax.random.split(k_params, len(layer_dims))
    params = [init_graph_conv_params(k, fi, fo) for k, (fi, fo) in zip(keys, layer_dims)]

    # One-time preprocessing (normalize + pad + cast), then the fused kernel call.
    prepared = prepare_gcn_inputs(adj, x, params)
    out = basic_graph_model_forward(prepared, nonlinearity="elu")
    out = jax.block_until_ready(out)
    assert out.shape == (N, OUTPUT_SIZE)

    a_norm = normalize_adjacency(adj)
    ref = jax.block_until_ready(_reference_forward(a_norm, x, params, nonlinearity="elu"))
    assert bool(jnp.allclose(out, ref, atol=2e-3, rtol=2e-3)), "mismatch vs reference"

    print("KERNEL_OK")
</pallas_src>

<mosaic_0001>
module attributes {stable_mosaic.version = 11 : i64} {
  func.func @_fused_gcn_kernel(%arg0: memref<128x128xbf16, #tpu.memory_space<vmem>>, %arg1: memref<128x128xbf16, #tpu.memory_space<vmem>>, %arg2: memref<128x128xbf16, #tpu.memory_space<vmem>>, %arg3: memref<1x128xf32, #tpu.memory_space<vmem>>, %arg4: memref<128x128xbf16, #tpu.memory_space<vmem>>, %arg5: memref<1x128xf32, #tpu.memory_space<vmem>>, %arg6: memref<128x128xbf16, #tpu.memory_space<vmem>>, %arg7: memref<1x128xf32, #tpu.memory_space<vmem>>, %arg8: memref<128x128xf32, #tpu.memory_space<vmem>>) attributes {dimension_semantics = [], scalar_prefetch = 0 : i64, scratch_operands = 0 : i64, tpu.core_type = #tpu.core_type<tc>} {
    %c0 = arith.constant 0 : index
    %c0_0 = arith.constant 0 : index
    %0 = vector.load %arg0[%c0, %c0_0] : memref<128x128xbf16, #tpu.memory_space<vmem>>, vector<128x128xbf16>
    %c0_1 = arith.constant 0 : index
    %c0_2 = arith.constant 0 : index
    %1 = vector.load %arg1[%c0_1, %c0_2] : memref<128x128xbf16, #tpu.memory_space<vmem>>, vector<128x128xbf16>
    %c0_3 = arith.constant 0 : index
    %c0_4 = arith.constant 0 : index
    %2 = vector.load %arg2[%c0_3, %c0_4] : memref<128x128xbf16, #tpu.memory_space<vmem>>, vector<128x128xbf16>
    %cst = arith.constant dense<0.000000e+00> : vector<128x128xf32>
    %3 = tpu.matmul %1, %2, %cst {dimension_numbers = #tpu.dot_dimension_numbers<[1], [0], [0], [1], [0, 0, 1, 1], [], []>} : vector<128x128xbf16>, vector<128x128xbf16>, vector<128x128xf32> -> vector<128x128xf32>
    %4 = arith.truncf %3 : vector<128x128xf32> to vector<128x128xbf16>
    %cst_5 = arith.constant dense<0.000000e+00> : vector<128x128xf32>
    %5 = tpu.matmul %0, %4, %cst_5 {dimension_numbers = #tpu.dot_dimension_numbers<[1], [0], [0], [1], [0, 0, 1, 1], [], []>} : vector<128x128xbf16>, vector<128x128xbf16>, vector<128x128xf32> -> vector<128x128xf32>
    %c0_6 = arith.constant 0 : index
    %c0_7 = arith.constant 0 : index
    %6 = vector.load %arg3[%c0_6, %c0_7] : memref<1x128xf32, #tpu.memory_space<vmem>>, vector<1x128xf32>
    %7 = vector.broadcast %6 : vector<1x128xf32> to vector<128x128xf32>
    %8 = arith.addf %5, %7 : vector<128x128xf32>
    %cst_8 = arith.constant 0.000000e+00 : f32
    %9 = vector.broadcast %cst_8 : f32 to vector<128x128xf32>
    %10 = arith.cmpf ogt, %8, %9 : vector<128x128xf32>
    %cst_9 = arith.constant 0.000000e+00 : f32
    %11 = vector.broadcast %cst_9 : f32 to vector<128x128xf32>
    %12 = arith.minimumf %8, %11 : vector<128x128xf32>
    %13 = math.exp %12 : vector<128x128xf32>
    %cst_10 = arith.constant 1.000000e+00 : f32
    %14 = vector.broadcast %cst_10 : f32 to vector<128x128xf32>
    %15 = arith.subf %13, %14 : vector<128x128xf32>
    %16 = arith.select %10, %8, %15 : vector<128x128xi1>, vector<128x128xf32>
    %17 = arith.truncf %16 : vector<128x128xf32> to vector<128x128xbf16>
    %c0_11 = arith.constant 0 : index
    %c0_12 = arith.constant 0 : index
    %18 = vector.load %arg4[%c0_11, %c0_12] : memref<128x128xbf16, #tpu.memory_space<vmem>>, vector<128x128xbf16>
    %cst_13 = arith.constant dense<0.000000e+00> : vector<128x128xf32>
    %19 = tpu.matmul %17, %18, %cst_13 {dimension_numbers = #tpu.dot_dimension_numbers<[1], [0], [0], [1], [0, 0, 1, 1], [], []>} : vector<128x128xbf16>, vector<128x128xbf16>, vector<128x128xf32> -> vector<128x128xf32>
    %20 = arith.truncf %19 : vector<128x128xf32> to vector<128x128xbf16>
    %cst_14 = arith.constant dense<0.000000e+00> : vector<128x128xf32>
    %21 = tpu.matmul %0, %20, %cst_14 {dimension_numbers = #tpu.dot_dimension_numbers<[1], [0], [0], [1], [0, 0, 1, 1], [], []>} : vector<128x128xbf16>, vector<128x128xbf16>, vector<128x128xf32> -> vector<128x128xf32>
    %c0_15 = arith.constant 0 : index
    %c0_16 = arith.constant 0 : index
    %22 = vector.load %arg5[%c0_15, %c0_16] : memref<1x128xf32, #tpu.memory_space<vmem>>, vector<1x128xf32>
    %23 = vector.broadcast %22 : vector<1x128xf32> to vector<128x128xf32>
    %24 = arith.addf %21, %23 : vector<128x128xf32>
    %cst_17 = arith.constant 0.000000e+00 : f32
    %25 = vector.broadcast %cst_17 : f32 to vector<128x128xf32>
    %26 = arith.cmpf ogt, %24, %25 : vector<128x128xf32>
    %cst_18 = arith.constant 0.000000e+00 : f32
    %27 = vector.broadcast %cst_18 : f32 to vector<128x128xf32>
    %28 = arith.minimumf %24, %27 : vector<128x128xf32>
    %29 = math.exp %28 : vector<128x128xf32>
    %cst_19 = arith.constant 1.000000e+00 : f32
    %30 = vector.broadcast %cst_19 : f32 to vector<128x128xf32>
    %31 = arith.subf %29, %30 : vector<128x128xf32>
    %32 = arith.select %26, %24, %31 : vector<128x128xi1>, vector<128x128xf32>
    %33 = arith.truncf %32 : vector<128x128xf32> to vector<128x128xbf16>
    %c0_20 = arith.constant 0 : index
    %c0_21 = arith.constant 0 : index
    %34 = vector.load %arg6[%c0_20, %c0_21] : memref<128x128xbf16, #tpu.memory_space<vmem>>, vector<128x128xbf16>
    %cst_22 = arith.constant dense<0.000000e+00> : vector<128x128xf32>
    %35 = tpu.matmul %33, %34, %cst_22 {dimension_numbers = #tpu.dot_dimension_numbers<[1], [0], [0], [1], [0, 0, 1, 1], [], []>} : vector<128x128xbf16>, vector<128x128xbf16>, vector<128x128xf32> -> vector<128x128xf32>
    %36 = arith.truncf %35 : vector<128x128xf32> to vector<128x128xbf16>
    %cst_23 = arith.constant dense<0.000000e+00> : vector<128x128xf32>
    %37 = tpu.matmul %0, %36, %cst_23 {dimension_numbers = #tpu.dot_dimension_numbers<[1], [0], [0], [1], [0, 0, 1, 1], [], []>} : vector<128x128xbf16>, vector<128x128xbf16>, vector<128x128xf32> -> vector<128x128xf32>
    %c0_24 = arith.constant 0 : index
    %c0_25 = arith.constant 0 : index
    %38 = vector.load %arg7[%c0_24, %c0_25] : memref<1x128xf32, #tpu.memory_space<vmem>>, vector<1x128xf32>
    %39 = vector.broadcast %38 : vector<1x128xf32> to vector<128x128xf32>
    %40 = arith.addf %37, %39 : vector<128x128xf32>
    %c0_26 = arith.constant 0 : index
    %c0_27 = arith.constant 0 : index
    %41 = vector.load %arg8[%c0_26, %c0_27] : memref<128x128xf32, #tpu.memory_space<vmem>>, vector<128x128xf32>
    tpu.vector_store %arg8[%c0_26, %c0_27], %40 {strides = array<i32>} : memref<128x128xf32, #tpu.memory_space<vmem>>, vector<128x128xf32>,
    return
  }
}

</mosaic_0001>

<bundles_post_ra>
// kernel: tpu_custom_call.1
= control target key start
LH: loop header
LB: loop body
LE: loop exit
PB: predicated region body
PF: predicated region fallthrough
CT: control target
= control target key end

     0   :  { %13 = vsyncpa [#allocation3], 0  ;;  %s1638_s0 = inlined_call_operand.hbm [shape: bf16[128,128], index: 0, kind: input, shape index: {}]   ;;  %s1639_s1 = inlined_call_operand.hbm [shape: bf16[128,128], index: 1, kind: input, shape index: {}]   ;;  %s1640_s2 = inlined_call_operand.hbm [shape: bf16[128,128], index: 2, kind: input, shape index: {}]   ;;  %s1641_s3 = inlined_call_operand.vmem [shape: f32[1,128], index: 3, kind: input, shape index: {}]   ;;  %s1642_s4 = inlined_call_operand.hbm [shape: bf16[128,128], index: 4, kind: input, shape index: {}]   ;;  %s1643_s5 = inlined_call_operand.vmem [shape: f32[1,128], index: 5, kind: input, shape index: {}]   ;;  %s1644_s6 = inlined_call_operand.hbm [shape: bf16[128,128], index: 6, kind: input, shape index: {}]   ;;  %s1645_s7 = inlined_call_operand.vmem [shape: f32[1,128], index: 7, kind: input, shape index: {}]   ;;  %s1646_s8 = inlined_call_operand.hbm [shape: f32[128,128], index: 8, kind: output, shape index: {}]  }
   0x1   :  { %14 = vsyncpa [#allocation6], 0 }
   0x2   :  { %15 = vsyncpa [#allocation9], 0 }
   0x3   :  { %16 = vsyncpa [#allocation4], 0  ;;  %s34_s29 = sshll.u32 %s1639_s1, 4  ;;  %s1480_s30 = smov [#allocation5]   ;;  %s35_s29 = int_to_ptr.hbm [resolvable:$true] %s34_s29 }
   0x4   :  { %s36_s9 = sshll.u32 %s1480_s30, 4  ;;  %s62_s12 = sshll.u32 %s1642_s4, 4  ;;  %s37_s9 = int_to_ptr.vmem [resolvable:$true] %s36_s9  ;;  %s63_s12 = int_to_ptr.hbm [resolvable:$true] %s62_s12 }
   0x5   :  { %s1481_s13 = smov 64   ;;  %s1482_s14 = smov 4  }
   0x6   :  { %42 = dma.hbm_to_vmem [thread:$0]  %s35_s29, 1024, %s37_s9, [#allocation6], %s1481_s13, %s1481_s13, %s1482_s14  }
   0x7   :  { %s1483_s15 = smov [#allocation8]   ;;  %s21_s19 = sshll.u32 %s1638_s0, 4  ;;  %s22_s19 = int_to_ptr.hbm [resolvable:$true] %s21_s19 }
   0x8   :  { %s64_s16 = sshll.u32 %s1483_s15, 4  ;;  %s47_s21 = sshll.u32 %s1640_s2, 4  ;;  %s65_s16 = int_to_ptr.vmem [resolvable:$true] %s64_s16  ;;  %s48_s21 = int_to_ptr.hbm [resolvable:$true] %s47_s21 }
   0x9   :  { %70 = dma.hbm_to_vmem [thread:$0]  %s63_s12, 1024, %s65_s16, [#allocation9], %s1481_s13, %s1481_s13, %s1482_s14  }
   0xa   :  { %s1484_s22 = smov [#allocation2]   ;;  %s1485_s4 = smov [#allocation7]  }
   0xb   :  { %s23_s23 = sshll.u32 %s1484_s22, 4  ;;  %s49_s24 = sshll.u32 %s1485_s4, 4  ;;  %s24_s23 = int_to_ptr.vmem [resolvable:$true] %s23_s23  ;;  %s50_s24 = int_to_ptr.vmem [resolvable:$true] %s49_s24 }
   0xc   :  { %29 = dma.hbm_to_vmem [thread:$0]  %s22_s19, 1024, %s24_s23, [#allocation3], %s1481_s13, %s1481_s13, %s1482_s14  }
   0xd   :  { %s77_s27 = sshll.u32 %s1644_s6, 4  ;;  %s1486_s0 = smov [#allocation10]   ;;  %s78_s27 = int_to_ptr.hbm [resolvable:$true] %s77_s27 }
   0xe   :  { %55 = dma.hbm_to_vmem [thread:$0]  %s48_s21, 1024, %s50_s24, [#allocation6], %s1481_s13, %s1481_s13, %s1482_s14  }
   0xf   :  { %s79_s28 = sshll.u32 %s1486_s0, 4  ;;  %s80_s28 = int_to_ptr.vmem [resolvable:$true] %s79_s28 }
  0x10   :  { %85 = dma.hbm_to_vmem [thread:$0]  %s78_s27, 1024, %s80_s28, [#allocation9], %s1481_s13, %s1481_s13, %s1482_s14  }
  0x11   :  { %1472 = dma.done.wait [#allocation3], 1024  }
  0x12   :  { %1473 = vsyncadd [#allocation3], 4294966272 }
  0x13   :  { %1474 = dma.done.wait [#allocation6], 2048  }
  0x14   :  { %1475 = vsyncadd [#allocation6], 4294965248 }
  0x15   :  { %1476 = dma.done.wait [#allocation9], 2048  }
  0x16   :  { %1477 = vsyncadd [#allocation9], 4294965248  ;;  %v1218_v0 = vld [vmem:[#allocation7 + $0x38] sm:$0xff]  ;;  %v1217_v1 = vld [vmem:[#allocation7 + $0x30] sm:$0xff]  ;;  %s988_s12 = sshll.u32 %s1646_s8, 4  ;;  %s1488_s13 = smov 128   ;;  %s989_s12 = int_to_ptr.hbm [resolvable:$true] %s988_s12 }
  0x17   :  { %1235 = vmatpush.bf16.msra.mxu2 %v1218_v0  ;;  %252 = vmatpush.bf16.msra.mxu0 %v1218_v0  ;;  %v1216_v2 = vld [vmem:[#allocation7 + $0x28] sm:$0xff]  ;;  %v1215_v3 = vld [vmem:[#allocation7 + $0x20] sm:$0xff]  ;;  %v1214_v4 = vld [vmem:[#allocation7 + $0x18] sm:$0xff]  ;;  %s1489_s14 = smov 8  }
  0x18   :  { %v1213_v5 = vld [vmem:[#allocation7 + $0x10] sm:$0xff]  ;;  %v1212_v6 = vld [vmem:[#allocation7 + $0x8] sm:$0xff]  ;;  %v1211_v7 = vld [vmem:[#allocation7] sm:$0xff] }
  0x19   :  { %v1207_v8 = vld [vmem:[#allocation5 + $0x20] sm:$0xff]  ;;  %v1208_v10 = vld [vmem:[#allocation5 + $0x28] sm:$0xff]  ;;  %v1209_v12 = vld [vmem:[#allocation5 + $0x30] sm:$0xff] }
  0x1a   :  { %v1203_v9 = vld [vmem:[#allocation5] sm:$0xff]  ;;  %v1204_v11 = vld [vmem:[#allocation5 + $0x8] sm:$0xff]  ;;  %v1205_v13 = vld [vmem:[#allocation5 + $0x10] sm:$0xff] }
  0x1b   :  { %1236 = vmatpush.bf16.msra.mxu2 %v1217_v1  ;;  %253 = vmatpush.bf16.msra.mxu0 %v1217_v1  ;;  %v1210_v14 = vld [vmem:[#allocation5 + $0x38] sm:$0xff]  ;;  %v1550_v40 = vld [vmem:[#allocation2] sm:$0xff]  ;;  %v1556_v42 = vld [vmem:[#allocation2 + $0x8] sm:$0xff] }
  0x1c   :  { %v1206_v15 = vld [vmem:[#allocation5 + $0x18] sm:$0xff]  ;;  %v1553_v41 = vld [vmem:[#allocation2 + $0x20] sm:$0xff]  ;;  %v1559_v43 = vld [vmem:[#allocation2 + $0x28] sm:$0xff] }
  0x1d   :  { %v1226_v44 = vld [vmem:[#allocation8 + $0x38] sm:$0xff]  ;;  %v1562_v45 = vld [vmem:[#allocation2 + $0x10] sm:$0xff]  ;;  %v1224_v50 = vld [vmem:[#allocation8 + $0x28] sm:$0xff] }
  0x1e   :  { %v1564_v46 = vld [vmem:[#allocation2 + $0x30] sm:$0xff]  ;;  %v1568_v47 = vld [vmem:[#allocation2 + $0x18] sm:$0xff]  ;;  %v1223_v51 = vld [vmem:[#allocation8 + $0x20] sm:$0xff] }
  0x1f   :  { %1237 = vmatpush.bf16.msra.mxu2 %v1216_v2  ;;  %254 = vmatpush.bf16.msra.mxu0 %v1216_v2  ;;  %v1570_v48 = vld [vmem:[#allocation2 + $0x38] sm:$0xff]  ;;  %v1225_v49 = vld [vmem:[#allocation8 + $0x30] sm:$0xff]  ;;  %v1220_v54 = vld [vmem:[#allocation8 + $0x8] sm:$0xff] }
  0x20   :  { %v1222_v52 = vld [vmem:[#allocation8 + $0x18] sm:$0xff]  ;;  %v1221_v53 = vld [vmem:[#allocation8 + $0x10] sm:$0xff]  ;;  %v1219_v55 = vld [vmem:[#allocation8] sm:$0xff] }
  0x21   :  { %v1577_v56 = vld [vmem:[%s1641_s3] ss:$0 sm:$0xff] }
  0x23   :  { %1238 = vmatpush.bf16.msra.mxu2 %v1215_v3  ;;  %255 = vmatpush.bf16.msra.mxu0 %v1215_v3 }
  0x27   :  { %1239 = vmatpush.bf16.msra.mxu2 %v1214_v4  ;;  %256 = vmatpush.bf16.msra.mxu0 %v1214_v4 }
  0x2b   :  { %1240 = vmatpush.bf16.msra.mxu2 %v1213_v5  ;;  %257 = vmatpush.bf16.msra.mxu0 %v1213_v5 }
  0x2f   :  { %1241 = vmatpush.bf16.msra.mxu2 %v1212_v6  ;;  %258 = vmatpush.bf16.msra.mxu0 %v1212_v6 }
  0x33   :  { %1242 = vmatpush.bf16.msra.mxu2 %v1211_v7  ;;  %259 = vmatpush.bf16.msra.mxu0 %v1211_v7 }
  0x36   :  { %280 = vmatmul.bf16.vlgmr.msra.gmra.mxu2 %v1207_v8  ;;  %260 = vmatmul.bf16.vlgmr.msra.gmra.mxu0 %v1203_v9 }
  0x37   :  { %578 = vmatpush.bf16.msrb.mxu2 %v1226_v44 }
  0x3b   :  { %579 = vmatpush.bf16.msrb.mxu2 %v1225_v49 }
  0x3f   :  { %580 = vmatpush.bf16.msrb.mxu2 %v1224_v50 }
  0x43   :  { %581 = vmatpush.bf16.msrb.mxu2 %v1223_v51 }
  0x46   :  { %285 = vmatmul.bf16.gmra.mxu2 %v1208_v10  ;;  %265 = vmatmul.bf16.gmra.mxu0 %v1204_v11 }
  0x47   :  { %582 = vmatpush.bf16.msrb.mxu2 %v1222_v52 }
  0x4b   :  { %583 = vmatpush.bf16.msrb.mxu2 %v1221_v53 }
  0x4f   :  { %584 = vmatpush.bf16.msrb.mxu2 %v1220_v54 }
  0x53   :  { %585 = vmatpush.bf16.msrb.mxu2 %v1219_v55 }
  0x56   :  { %290 = vmatmul.bf16.gmra.mxu2 %v1209_v12  ;;  %270 = vmatmul.bf16.gmra.mxu0 %v1205_v13 }
  0x66   :  { %295 = vmatmul.bf16.gmra.mxu2 %v1210_v14  ;;  %275 = vmatmul.bf16.gmra.mxu0 %v1206_v15 }
  0xb3   :  { %v261_v17 = vpop.f32.mrf.mxu0 }
  0xb9   :  { %v281_v16 = vpop.f32.mrf.mxu2 }
  0xbb   :  { %v263_v19 = vpop.f32.mrf.mxu0 }
  0xbc   :  { %v301_v39 = vpack.c.bf16 %v263_v19, %v261_v17 }
  0xc1   :  { %v283_v18 = vpop.f32.mrf.mxu2 }
  0xc2   :  { %v305_v34 = vpack.c.bf16 %v283_v18, %v281_v16 }
  0xc3   :  { %v266_v21 = vpop.f32.mrf.mxu0 }
  0xc9   :  { %v286_v20 = vpop.f32.mrf.mxu2 }
  0xcb   :  { %v268_v23 = vpop.f32.mrf.mxu0 }
  0xcc   :  { %v302_v38 = vpack.c.bf16 %v268_v23, %v266_v21 }
  0xd1   :  { %v288_v22 = vpop.f32.mrf.mxu2 }
  0xd2   :  { %v306_v33 = vpack.c.bf16 %v288_v22, %v286_v20 }
  0xd3   :  { %v271_v25 = vpop.f32.mrf.mxu0 }
  0xd9   :  { %v291_v24 = vpop.f32.mrf.mxu2 }
  0xdb   :  { %v273_v28 = vpop.f32.mrf.mxu0 }
  0xdc   :  { %v303_v37 = vpack.c.bf16 %v273_v28, %v271_v25 }
  0xe1   :  { %v293_v26 = vpop.f32.mrf.mxu2 }
  0xe2   :  { %v307_v32 = vpack.c.bf16 %v293_v26, %v291_v24 }
  0xe3   :  { %v276_v31 = vpop.f32.mrf.mxu0 }
  0xe9   :  { %v296_v27 = vpop.f32.mrf.mxu2 }
  0xeb   :  { %v278_v35 = vpop.f32.mrf.mxu0 }
  0xec   :  { %v304_v36 = vpack.c.bf16 %v278_v35, %v276_v31 }
  0xf1   :  { %v298_v29 = vpop.f32.mrf.mxu2 }
  0xf2   :  { %v308_v30 = vpack.c.bf16 %v298_v29, %v296_v27 }
  0xf4   :  { %361 = vmatpush.bf16.msra.mxu1 %v308_v30  ;;  %1243 = vmatpush.bf16.msra.mxu3 %v308_v30 }
  0xf8   :  { %362 = vmatpush.bf16.msra.mxu1 %v307_v32  ;;  %1244 = vmatpush.bf16.msra.mxu3 %v307_v32 }
  0xfc   :  { %363 = vmatpush.bf16.msra.mxu1 %v306_v33  ;;  %1245 = vmatpush.bf16.msra.mxu3 %v306_v33 }
 0x100   :  { %364 = vmatpush.bf16.msra.mxu1 %v305_v34  ;;  %1246 = vmatpush.bf16.msra.mxu3 %v305_v34 }
 0x104   :  { %365 = vmatpush.bf16.msra.mxu1 %v304_v36  ;;  %1247 = vmatpush.bf16.msra.mxu3 %v304_v36 }
 0x108   :  { %366 = vmatpush.bf16.msra.mxu1 %v303_v37  ;;  %1248 = vmatpush.bf16.msra.mxu3 %v303_v37 }
 0x10c   :  { %367 = vmatpush.bf16.msra.mxu1 %v302_v38  ;;  %1249 = vmatpush.bf16.msra.mxu3 %v302_v38 }
 0x110   :  { %368 = vmatpush.bf16.msra.mxu1 %v301_v39  ;;  %1250 = vmatpush.bf16.msra.mxu3 %v301_v39 }
 0x113   :  { %369 = vmatmul.bf16.vlgmr.msra.gmra.mxu1 %v1550_v40  ;;  %389 = vmatmul.bf16.vlgmr.msra.gmra.mxu3 %v1553_v41 }
 0x123   :  { %374 = vmatmul.bf16.gmra.mxu1 %v1556_v42  ;;  %394 = vmatmul.bf16.gmra.mxu3 %v1559_v43 }
 0x133   :  { %379 = vmatmul.bf16.gmra.mxu1 %v1562_v45  ;;  %399 = vmatmul.bf16.gmra.mxu3 %v1564_v46 }
 0x143   :  { %384 = vmatmul.bf16.gmra.mxu1 %v1568_v47  ;;  %404 = vmatmul.bf16.gmra.mxu3 %v1570_v48 }
 0x190   :  { %v370_v57 = vpop.f32.mrf.mxu1 }
 0x191   :  { %v371_v58 = vadd.f32 %v1577_v56, %v370_v57 }
 0x193   :  { %v426_v59 = vmin.f32 %v371_v58, 0.0  ;;  %vm410_vm0 = vcmp.gt.f32.partialorder %v371_v58, 0.0 }
 0x195   :  { %v442_v60 = vmul.f32 1.442695, %v426_v59 }
 0x196   :  { %v390_v20 = vpop.f32.mrf.mxu3 }
 0x197   :  { %1264 = vpow2.f32 %v442_v60  ;;  %v391_v57 = vadd.f32 %v1577_v56, %v390_v20 }
 0x198   :  { %v372_v61 = vpop.f32.mrf.mxu1 }
 0x199   :  { %v373_v62 = vadd.f32 %v1577_v56, %v372_v61  ;;  %v434_v60 = vmin.f32 %v391_v57, 0.0  ;;  %vm418_vm8 = vcmp.gt.f32.partialorder %v391_v57, 0.0 }
 0x19b   :  { %v427_v63 = vmin.f32 %v373_v62, 0.0  ;;  %vm411_vm1 = vcmp.gt.f32.partialorder %v373_v62, 0.0 }
 0x19d   :  { %v444_v0 = vmul.f32 1.442695, %v427_v63  ;;  %v1265_v2 = vpop.eup %1264 }
 0x19e   :  { %v1099_v5 = vadd.f32 -1.0, %v1265_v2  ;;  %v392_v32 = vpop.f32.mrf.mxu3 }
 0x19f   :  { %1266 = vpow2.f32 %v444_v0  ;;  %v458_v0 = vmul.f32 1.442695, %v434_v60 }
 0x1a0   :  { %v375_v1 = vpop.f32.mrf.mxu1  ;;  %v490_v10 = vsel %vm410_vm0, %v371_v58, %v1099_v5  ;;  %v393_v58 = vadd.f32 %v1577_v56, %v392_v32 }
 0x1a1   :  { %v376_v3 = vadd.f32 %v1577_v56, %v375_v1 }
 0x1a2   :  { %vm419_vm9 = vcmp.gt.f32.partialorder %v393_v58, 0.0 }
 0x1a3   :  { %v428_v4 = vmin.f32 %v376_v3, 0.0  ;;  %vm412_vm2 = vcmp.gt.f32.partialorder %v376_v3, 0.0 }
 0x1a5   :  { %v1267_v6 = vpop.eup %1266  ;;  %v446_v8 = vmul.f32 1.442695, %v428_v4 }
 0x1a6   :  { %v1100_v7 = vadd.f32 -1.0, %v1267_v6  ;;  %v395_v50 = vpop.f32.mrf.mxu3 }
 0x1a7   :  { %1268 = vpow2.f32 %v446_v8  ;;  %v396_v8 = vadd.f32 %v1577_v56, %v395_v50 }
 0x1a8   :  { %v377_v9 = vpop.f32.mrf.mxu1  ;;  %v491_v11 = vsel %vm411_vm1, %v373_v62, %v1100_v7  ;;  %v435_v62 = vmin.f32 %v393_v58, 0.0 }
 0x1a9   :  { %v378_v12 = vadd.f32 %v1577_v56, %v377_v9  ;;  %v506_v13 = vpack.c.bf16 %v491_v11, %v490_v10  ;;  %vm420_vm10 = vcmp.gt.f32.partialorder %v396_v8, 0.0 }
 0x1ab   :  { %v429_v14 = vmin.f32 %v378_v12, 0.0  ;;  %586 = vmatmul.bf16.vlgmr.msrb.gmra.mxu2 %v506_v13  ;;  %vm413_vm3 = vcmp.gt.f32.partialorder %v378_v12, 0.0  ;;  %v436_v13 = vmin.f32 %v396_v8, 0.0 }
 0x1ad   :  { %v448_v15 = vmul.f32 1.442695, %v429_v14  ;;  %v1269_v17 = vpop.eup %1268 }
 0x1ae   :  { %v1101_v21 = vadd.f32 -1.0, %v1269_v17  ;;  %v397_v63 = vpop.f32.mrf.mxu3  ;;  %v462_v17 = vmul.f32 1.442695, %v436_v13 }
 0x1af   :  { %1270 = vpow2.f32 %v448_v15  ;;  %v398_v10 = vadd.f32 %v1577_v56, %v397_v63 }
 0x1b0   :  { %v380_v16 = vpop.f32.mrf.mxu1  ;;  %v492_v26 = vsel %vm412_vm2, %v376_v3, %v1101_v21  ;;  %v460_v3 = vmul.f32 1.442695, %v435_v62 }
 0x1b1   :  { %v381_v18 = vadd.f32 %v1577_v56, %v380_v16  ;;  %v437_v14 = vmin.f32 %v398_v10, 0.0  ;;  %vm421_vm11 = vcmp.gt.f32.partialorder %v398_v10, 0.0 }
 0x1b3   :  { %v430_v19 = vmin.f32 %v381_v18, 0.0  ;;  %vm414_vm4 = vcmp.gt.f32.partialorder %v381_v18, 0.0 }
 0x1b5   :  { %v1271_v22 = vpop.eup %1270  ;;  %v450_v24 = vmul.f32 1.442695, %v430_v19 }
 0x1b6   :  { %v1102_v23 = vadd.f32 -1.0, %v1271_v22  ;;  %v400_v9 = vpop.f32.mrf.mxu3 }
 0x1b7   :  { %1272 = vpow2.f32 %v450_v24 }
 0x1b8   :  { %v382_v25 = vpop.f32.mrf.mxu1  ;;  %v493_v27 = vsel %vm413_vm3, %v378_v12, %v1102_v23  ;;  %v401_v23 = vadd.f32 %v1577_v56, %v400_v9 }
 0x1b9   :  { %v383_v28 = vadd.f32 %v1577_v56, %v382_v25  ;;  %v507_v29 = vpack.c.bf16 %v493_v27, %v492_v26 }
 0x1ba   :  { %v438_v27 = vmin.f32 %v401_v23, 0.0  ;;  %vm422_vm12 = vcmp.gt.f32.partialorder %v401_v23, 0.0 }
 0x1bb   :  { %v431_v30 = vmin.f32 %v383_v28, 0.0  ;;  %591 = vmatmul.bf16.gmra.mxu2 %v507_v29  ;;  %vm415_vm5 = vcmp.gt.f32.partialorder %v383_v28, 0.0 }
 0x1bc   :  { %v466_v32 = vmul.f32 1.442695, %v438_v27  ;;  %v1233_v27 = vld [vmem:[#allocation10 + $0x30] sm:$0xff] }
 0x1bd   :  { %v452_v31 = vmul.f32 1.442695, %v431_v30  ;;  %v1273_v34 = vpop.eup %1272 }
 0x1be   :  { %v1103_v37 = vadd.f32 -1.0, %v1273_v34  ;;  %v402_v19 = vpop.f32.mrf.mxu3 }
 0x1bf   :  { %1274 = vpow2.f32 %v452_v31  ;;  %v403_v24 = vadd.f32 %v1577_v56, %v402_v19 }
 0x1c0   :  { %v385_v33 = vpop.f32.mrf.mxu1  ;;  %v494_v51 = vsel %vm414_vm4, %v381_v18, %v1103_v37  ;;  %v464_v18 = vmul.f32 1.442695, %v437_v14 }
 0x1c1   :  { %v386_v35 = vadd.f32 %v1577_v56, %v385_v33  ;;  %v439_v29 = vmin.f32 %v403_v24, 0.0  ;;  %vm423_vm13 = vcmp.gt.f32.partialorder %v403_v24, 0.0 }
 0x1c3   :  { %v432_v36 = vmin.f32 %v386_v35, 0.0  ;;  %vm416_vm6 = vcmp.gt.f32.partialorder %v386_v35, 0.0  ;;  %v468_v33 = vmul.f32 1.442695, %v439_v29  ;;  %v1231_v29 = vld [vmem:[#allocation10 + $0x20] sm:$0xff] }
 0x1c5   :  { %v1275_v38 = vpop.eup %1274  ;;  %v454_v44 = vmul.f32 1.442695, %v432_v36 }
 0x1c6   :  { %v1104_v39 = vadd.f32 -1.0, %v1275_v38 }
 0x1c7   :  { %1276 = vpow2.f32 %v454_v44 }
 0x1c8   :  { %v387_v49 = vpop.f32.mrf.mxu1  ;;  %v495_v52 = vsel %vm415_vm5, %v383_v28, %v1104_v39  ;;  %v405_v28 = vpop.f32.mrf.mxu3 }
 0x1c9   :  { %v388_v53 = vadd.f32 %v1577_v56, %v387_v49  ;;  %v508_v54 = vpack.c.bf16 %v495_v52, %v494_v51  ;;  %v406_v38 = vadd.f32 %v1577_v56, %v405_v28  ;;  %v1232_v28 = vld [vmem:[#allocation10 + $0x28] sm:$0xff] }
 0x1cb   :  { %v433_v55 = vmin.f32 %v388_v53, 0.0  ;;  %596 = vmatmul.bf16.gmra.mxu2 %v508_v54  ;;  %vm417_vm7 = vcmp.gt.f32.partialorder %v388_v53, 0.0  ;;  %v440_v50 = vmin.f32 %v406_v38, 0.0  ;;  %vm424_vm14 = vcmp.gt.f32.partialorder %v406_v38, 0.0 }
 0x1cd   :  { %v456_v59 = vmul.f32 1.442695, %v433_v55  ;;  %v1277_v61 = vpop.eup %1276  ;;  %v470_v54 = vmul.f32 1.442695, %v440_v50 }
 0x1ce   :  { %v1105_v1 = vadd.f32 -1.0, %v1277_v61 }
 0x1cf   :  { %1278 = vpow2.f32 %v456_v59 }
 0x1d0   :  { %1280 = vpow2.f32 %v458_v0  ;;  %v496_v5 = vsel %vm416_vm6, %v386_v35, %v1105_v1  ;;  %v407_v37 = vpop.f32.mrf.mxu3 }
 0x1d1   :  { %1282 = vpow2.f32 %v460_v3  ;;  %v408_v39 = vadd.f32 %v1577_v56, %v407_v37 }
 0x1d2   :  { %1284 = vpow2.f32 %v462_v17 }
 0x1d3   :  { %1286 = vpow2.f32 %v464_v18  ;;  %v441_v51 = vmin.f32 %v408_v39, 0.0  ;;  %vm425_vm15 = vcmp.gt.f32.partialorder %v408_v39, 0.0 }
 0x1d4   :  { %1288 = vpow2.f32 %v466_v32  ;;  %v1228_v32 = vld [vmem:[#allocation10 + $0x8] sm:$0xff] }
 0x1d5   :  { %v1279_v2 = vpop.eup %1278  ;;  %1290 = vpow2.f32 %v468_v33  ;;  %v472_v55 = vmul.f32 1.442695, %v441_v51  ;;  %v1227_v33 = vld [vmem:[#allocation10] sm:$0xff] }
 0x1d6   :  { %v1106_v4 = vadd.f32 -1.0, %v1279_v2  ;;  %v1281_v11 = vpop.eup %1280  ;;  %1292 = vpow2.f32 %v470_v54 }
 0x1d7   :  { %v1283_v12 = vpop.eup %1282  ;;  %v1107_v15 = vadd.f32 -1.0, %v1281_v11  ;;  %1294 = vpow2.f32 %v472_v55 }
 0x1d8   :  { %v497_v6 = vsel %vm417_vm7, %v388_v53, %v1106_v4  ;;  %v1108_v16 = vadd.f32 -1.0, %v1283_v12  ;;  %v1285_v25 = vpop.eup %1284 }
 0x1d9   :  { %v509_v7 = vpack.c.bf16 %v497_v6, %v496_v5  ;;  %v498_v20 = vsel %vm418_vm8, %v391_v57, %v1107_v15  ;;  %v1287_v26 = vpop.eup %1286  ;;  %v1109_v30 = vadd.f32 -1.0, %v1285_v25 }
 0x1da   :  { %v499_v21 = vsel %vm419_vm9, %v393_v58, %v1108_v16  ;;  %v1110_v31 = vadd.f32 -1.0, %v1287_v26  ;;  %v1289_v44 = vpop.eup %1288  ;;  %v1234_v26 = vld [vmem:[#allocation10 + $0x38] sm:$0xff] }
 0x1db   :  { %601 = vmatmul.bf16.gmra.mxu2 %v509_v7  ;;  %v510_v22 = vpack.c.bf16 %v499_v21, %v498_v20  ;;  %v500_v34 = vsel %vm420_vm10, %v396_v8, %v1109_v30  ;;  %v1291_v49 = vpop.eup %1290  ;;  %v1111_v52 = vadd.f32 -1.0, %v1289_v44  ;;  %856 = vmatpush.bf16.msrb.mxu0 %v1234_v26  ;;  %v1230_v30 = vld [vmem:[#allocation10 + $0x18] sm:$0xff] }
 0x1dc   :  { %v501_v35 = vsel %vm421_vm11, %v398_v10, %v1110_v31  ;;  %v1112_v53 = vadd.f32 -1.0, %v1291_v49  ;;  %v1293_v60 = vpop.eup %1292  ;;  %v1229_v31 = vld [vmem:[#allocation10 + $0x10] sm:$0xff] }
 0x1dd   :  { %v511_v36 = vpack.c.bf16 %v501_v35, %v500_v34  ;;  %v502_v57 = vsel %vm422_vm12, %v401_v23, %v1111_v52  ;;  %v1295_v61 = vpop.eup %1294  ;;  %v1113_v62 = vadd.f32 -1.0, %v1293_v60  ;;  %v1606_v34 = vld [vmem:[%s1643_s5] ss:$0 sm:$0xff] }
 0x1de   :  { %v503_v58 = vsel %vm423_vm13, %v403_v24, %v1112_v53  ;;  %v1114_v56 = vadd.f32 -1.0, %v1295_v61 }
 0x1df   :  { %v512_v59 = vpack.c.bf16 %v503_v58, %v502_v57  ;;  %v504_v63 = vsel %vm424_vm14, %v406_v38, %v1113_v62  ;;  %857 = vmatpush.bf16.msrb.mxu0 %v1233_v27 }
 0x1e0   :  { %v505_v0 = vsel %vm425_vm15, %v408_v39, %v1114_v56 }
 0x1e1   :  { %v513_v1 = vpack.c.bf16 %v505_v0, %v504_v63 }
 0x1e3   :  { %858 = vmatpush.bf16.msrb.mxu0 %v1232_v28 }
 0x1e7   :  { %859 = vmatpush.bf16.msrb.mxu0 %v1231_v29 }
 0x1eb   :  { %606 = vmatmul.bf16.gmra.mxu2 %v510_v22  ;;  %860 = vmatpush.bf16.msrb.mxu0 %v1230_v30 }
 0x1ef   :  { %861 = vmatpush.bf16.msrb.mxu0 %v1229_v31 }
 0x1f3   :  { %862 = vmatpush.bf16.msrb.mxu0 %v1228_v32 }
 0x1f7   :  { %863 = vmatpush.bf16.msrb.mxu0 %v1227_v33 }
 0x1fb   :  { %611 = vmatmul.bf16.gmra.mxu2 %v511_v36 }
 0x20b   :  { %616 = vmatmul.bf16.gmra.mxu2 %v512_v59 }
 0x21b   :  { %621 = vmatmul.bf16.gmra.mxu2 %v513_v1 }
 0x22e   :  { %v587_v2 = vpop.f32.mrf.mxu2 }
 0x236   :  { %v589_v3 = vpop.f32.mrf.mxu2 }
 0x237   :  { %v627_v4 = vpack.c.bf16 %v589_v3, %v587_v2 }
 0x23e   :  { %v592_v5 = vpop.f32.mrf.mxu2 }
 0x246   :  { %v594_v6 = vpop.f32.mrf.mxu2 }
 0x247   :  { %v628_v7 = vpack.c.bf16 %v594_v6, %v592_v5 }
 0x24e   :  { %v597_v8 = vpop.f32.mrf.mxu2 }
 0x256   :  { %v599_v9 = vpop.f32.mrf.mxu2 }
 0x257   :  { %v629_v10 = vpack.c.bf16 %v599_v9, %v597_v8 }
 0x25e   :  { %v602_v11 = vpop.f32.mrf.mxu2 }
 0x266   :  { %v604_v12 = vpop.f32.mrf.mxu2 }
 0x267   :  { %v630_v13 = vpack.c.bf16 %v604_v12, %v602_v11 }
 0x26e   :  { %v607_v14 = vpop.f32.mrf.mxu2 }
 0x276   :  { %v609_v15 = vpop.f32.mrf.mxu2 }
 0x277   :  { %v631_v25 = vpack.c.bf16 %v609_v15, %v607_v14 }
 0x27e   :  { %v612_v16 = vpop.f32.mrf.mxu2 }
 0x286   :  { %v614_v17 = vpop.f32.mrf.mxu2 }
 0x287   :  { %v632_v24 = vpack.c.bf16 %v614_v17, %v612_v16 }
 0x28e   :  { %v617_v18 = vpop.f32.mrf.mxu2 }
 0x296   :  { %v619_v19 = vpop.f32.mrf.mxu2 }
 0x297   :  { %v633_v23 = vpack.c.bf16 %v619_v19, %v617_v18 }
 0x29e   :  { %v622_v20 = vpop.f32.mrf.mxu2 }
 0x2a6   :  { %v624_v21 = vpop.f32.mrf.mxu2 }
 0x2a7   :  { %v634_v22 = vpack.c.bf16 %v624_v21, %v622_v20 }
 0x2a9   :  { %639 = vmatpush.bf16.msrb.mxu3 %v634_v22 }
 0x2ad   :  { %640 = vmatpush.bf16.msrb.mxu3 %v633_v23 }
 0x2b1   :  { %641 = vmatpush.bf16.msrb.mxu3 %v632_v24 }
 0x2b5   :  { %642 = vmatpush.bf16.msrb.mxu3 %v631_v25 }
 0x2b9   :  { %643 = vmatpush.bf16.msrb.mxu3 %v630_v13 }
 0x2bd   :  { %644 = vmatpush.bf16.msrb.mxu3 %v629_v10 }
 0x2c1   :  { %645 = vmatpush.bf16.msrb.mxu3 %v628_v7 }
 0x2c5   :  { %646 = vmatpush.bf16.msrb.mxu3 %v627_v4 }
 0x2c8   :  { %647 = vmatmul.bf16.vlgmr.msrb.gmra.mxu3 %v1550_v40 }
 0x2d8   :  { %652 = vmatmul.bf16.gmra.mxu3 %v1556_v42 }
 0x2e8   :  { %657 = vmatmul.bf16.gmra.mxu3 %v1562_v45 }
 0x2f8   :  { %662 = vmatmul.bf16.gmra.mxu3 %v1568_v47 }
 0x308   :  { %667 = vmatmul.bf16.gmra.mxu3 %v1553_v41 }
 0x318   :  { %672 = vmatmul.bf16.gmra.mxu3 %v1559_v43 }
 0x328   :  { %677 = vmatmul.bf16.gmra.mxu3 %v1564_v46 }
 0x338   :  { %682 = vmatmul.bf16.gmra.mxu3 %v1570_v48 }
 0x34b   :  { %v648_v35 = vpop.f32.mrf.mxu3 }
 0x34c   :  { %v649_v36 = vadd.f32 %v1606_v34, %v648_v35 }
 0x34e   :  { %v704_v37 = vmin.f32 %v649_v36, 0.0  ;;  %vm688_vm0 = vcmp.gt.f32.partialorder %v649_v36, 0.0 }
 0x350   :  { %v720_v38 = vmul.f32 1.442695, %v704_v37 }
 0x352   :  { %1296 = vpow2.f32 %v720_v38 }
 0x353   :  { %v650_v39 = vpop.f32.mrf.mxu3 }
 0x354   :  { %v651_v44 = vadd.f32 %v1606_v34, %v650_v39 }
 0x356   :  { %v705_v49 = vmin.f32 %v651_v44, 0.0  ;;  %vm689_vm1 = vcmp.gt.f32.partialorder %v651_v44, 0.0 }
 0x358   :  { %v722_v50 = vmul.f32 1.442695, %v705_v49  ;;  %v1297_v52 = vpop.eup %1296 }
 0x359   :  { %v1147_v55 = vadd.f32 -1.0, %v1297_v52 }
 0x35a   :  { %1298 = vpow2.f32 %v722_v50 }
 0x35b   :  { %v653_v51 = vpop.f32.mrf.mxu3  ;;  %v768_v61 = vsel %vm688_vm0, %v649_v36, %v1147_v55 }
 0x35c   :  { %v654_v53 = vadd.f32 %v1606_v34, %v653_v51 }
 0x35e   :  { %v706_v54 = vmin.f32 %v654_v53, 0.0  ;;  %vm690_vm2 = vcmp.gt.f32.partialorder %v654_v53, 0.0 }
 0x360   :  { %v1299_v57 = vpop.eup %1298  ;;  %v724_v59 = vmul.f32 1.442695, %v706_v54 }
 0x361   :  { %v1148_v58 = vadd.f32 -1.0, %v1299_v57 }
 0x362   :  { %1300 = vpow2.f32 %v724_v59 }
 0x363   :  { %v655_v60 = vpop.f32.mrf.mxu3  ;;  %v769_v62 = vsel %vm689_vm1, %v651_v44, %v1148_v58 }
 0x364   :  { %v656_v56 = vadd.f32 %v1606_v34, %v655_v60  ;;  %v784_v63 = vpack.c.bf16 %v769_v62, %v768_v61 }
 0x366   :  { %v707_v0 = vmin.f32 %v656_v56, 0.0  ;;  %864 = vmatmul.bf16.vlgmr.msrb.gmra.mxu0 %v784_v63  ;;  %vm691_vm3 = vcmp.gt.f32.partialorder %v656_v56, 0.0 }
 0x368   :  { %v726_v1 = vmul.f32 1.442695, %v707_v0  ;;  %v1301_v3 = vpop.eup %1300 }
 0x369   :  { %v1149_v6 = vadd.f32 -1.0, %v1301_v3 }
 0x36a   :  { %1302 = vpow2.f32 %v726_v1 }
 0x36b   :  { %v658_v2 = vpop.f32.mrf.mxu3  ;;  %v770_v11 = vsel %vm690_vm2, %v654_v53, %v1149_v6 }
 0x36c   :  { %v659_v4 = vadd.f32 %v1606_v34, %v658_v2 }
 0x36e   :  { %v708_v5 = vmin.f32 %v659_v4, 0.0  ;;  %vm692_vm4 = vcmp.gt.f32.partialorder %v659_v4, 0.0 }
 0x370   :  { %v1303_v7 = vpop.eup %1302  ;;  %v728_v9 = vmul.f32 1.442695, %v708_v5 }
 0x371   :  { %v1150_v8 = vadd.f32 -1.0, %v1303_v7 }
 0x372   :  { %1304 = vpow2.f32 %v728_v9 }
 0x373   :  { %v660_v10 = vpop.f32.mrf.mxu3  ;;  %v771_v12 = vsel %vm691_vm3, %v656_v56, %v1150_v8 }
 0x374   :  { %v661_v13 = vadd.f32 %v1606_v34, %v660_v10  ;;  %v785_v14 = vpack.c.bf16 %v771_v12, %v770_v11 }
 0x376   :  { %v709_v15 = vmin.f32 %v661_v13, 0.0  ;;  %869 = vmatmul.bf16.gmra.mxu0 %v785_v14  ;;  %vm693_vm5 = vcmp.gt.f32.partialorder %v661_v13, 0.0 }
 0x378   :  { %v730_v16 = vmul.f32 1.442695, %v709_v15  ;;  %v1305_v18 = vpop.eup %1304 }
 0x379   :  { %v1151_v21 = vadd.f32 -1.0, %v1305_v18 }
 0x37a   :  { %1306 = vpow2.f32 %v730_v16 }
 0x37b   :  { %v663_v17 = vpop.f32.mrf.mxu3  ;;  %v772_v26 = vsel %vm692_vm4, %v659_v4, %v1151_v21 }
 0x37c   :  { %v664_v19 = vadd.f32 %v1606_v34, %v663_v17 }
 0x37e   :  { %v710_v20 = vmin.f32 %v664_v19, 0.0  ;;  %vm694_vm6 = vcmp.gt.f32.partialorder %v664_v19, 0.0 }
 0x380   :  { %v1307_v22 = vpop.eup %1306  ;;  %v732_v24 = vmul.f32 1.442695, %v710_v20 }
 0x381   :  { %v1152_v23 = vadd.f32 -1.0, %v1307_v22 }
 0x382   :  { %1308 = vpow2.f32 %v732_v24 }
 0x383   :  { %v665_v25 = vpop.f32.mrf.mxu3  ;;  %v773_v27 = vsel %vm693_vm5, %v661_v13, %v1152_v23 }
 0x384   :  { %v666_v28 = vadd.f32 %v1606_v34, %v665_v25  ;;  %v786_v29 = vpack.c.bf16 %v773_v27, %v772_v26 }
 0x386   :  { %v711_v30 = vmin.f32 %v666_v28, 0.0  ;;  %874 = vmatmul.bf16.gmra.mxu0 %v786_v29  ;;  %vm695_vm7 = vcmp.gt.f32.partialorder %v666_v28, 0.0 }
 0x388   :  { %v734_v31 = vmul.f32 1.442695, %v711_v30  ;;  %v1309_v33 = vpop.eup %1308 }
 0x389   :  { %v1153_v37 = vadd.f32 -1.0, %v1309_v33 }
 0x38a   :  { %1310 = vpow2.f32 %v734_v31 }
 0x38b   :  { %v668_v32 = vpop.f32.mrf.mxu3  ;;  %v774_v50 = vsel %vm694_vm6, %v664_v19, %v1153_v37 }
 0x38c   :  { %v669_v35 = vadd.f32 %v1606_v34, %v668_v32 }
 0x38e   :  { %v712_v36 = vmin.f32 %v669_v35, 0.0  ;;  %vm696_vm8 = vcmp.gt.f32.partialorder %v669_v35, 0.0 }
 0x390   :  { %v1311_v38 = vpop.eup %1310  ;;  %v736_v44 = vmul.f32 1.442695, %v712_v36 }
 0x391   :  { %v1154_v39 = vadd.f32 -1.0, %v1311_v38 }
 0x392   :  { %1312 = vpow2.f32 %v736_v44 }
 0x393   :  { %v670_v49 = vpop.f32.mrf.mxu3  ;;  %v775_v51 = vsel %vm695_vm7, %v666_v28, %v1154_v39 }
 0x394   :  { %v671_v52 = vadd.f32 %v1606_v34, %v670_v49  ;;  %v787_v53 = vpack.c.bf16 %v775_v51, %v774_v50 }
 0x396   :  { %v713_v54 = vmin.f32 %v671_v52, 0.0  ;;  %879 = vmatmul.bf16.gmra.mxu0 %v787_v53  ;;  %vm697_vm9 = vcmp.gt.f32.partialorder %v671_v52, 0.0 }
 0x398   :  { %v738_v55 = vmul.f32 1.442695, %v713_v54  ;;  %v1313_v58 = vpop.eup %1312 }
 0x399   :  { %v1155_v61 = vadd.f32 -1.0, %v1313_v58 }
 0x39a   :  { %1314 = vpow2.f32 %v738_v55 }
 0x39b   :  { %v673_v57 = vpop.f32.mrf.mxu3  ;;  %v776_v1 = vsel %vm696_vm8, %v669_v35, %v1155_v61 }
 0x39c   :  { %v674_v59 = vadd.f32 %v1606_v34, %v673_v57 }
 0x39e   :  { %v714_v60 = vmin.f32 %v674_v59, 0.0  ;;  %vm698_vm10 = vcmp.gt.f32.partialorder %v674_v59, 0.0 }
 0x3a0   :  { %v1315_v62 = vpop.eup %1314  ;;  %v740_v63 = vmul.f32 1.442695, %v714_v60 }
 0x3a1   :  { %v1156_v56 = vadd.f32 -1.0, %v1315_v62 }
 0x3a2   :  { %1316 = vpow2.f32 %v740_v63 }
 0x3a3   :  { %v675_v0 = vpop.f32.mrf.mxu3  ;;  %v777_v2 = vsel %vm697_vm9, %v671_v52, %v1156_v56 }
 0x3a4   :  { %v676_v3 = vadd.f32 %v1606_v34, %v675_v0  ;;  %v788_v4 = vpack.c.bf16 %v777_v2, %v776_v1 }
 0x3a6   :  { %v715_v5 = vmin.f32 %v676_v3, 0.0  ;;  %884 = vmatmul.bf16.gmra.mxu0 %v788_v4  ;;  %vm699_vm11 = vcmp.gt.f32.partialorder %v676_v3, 0.0 }
 0x3a8   :  { %v742_v6 = vmul.f32 1.442695, %v715_v5  ;;  %v1317_v8 = vpop.eup %1316 }
 0x3a9   :  { %v1157_v11 = vadd.f32 -1.0, %v1317_v8 }
 0x3aa   :  { %1318 = vpow2.f32 %v742_v6 }
 0x3ab   :  { %v678_v7 = vpop.f32.mrf.mxu3  ;;  %v778_v16 = vsel %vm698_vm10, %v674_v59, %v1157_v11 }
 0x3ac   :  { %v679_v9 = vadd.f32 %v1606_v34, %v678_v7 }
 0x3ae   :  { %v716_v10 = vmin.f32 %v679_v9, 0.0  ;;  %vm700_vm12 = vcmp.gt.f32.partialorder %v679_v9, 0.0 }
 0x3b0   :  { %v1319_v12 = vpop.eup %1318  ;;  %v744_v14 = vmul.f32 1.442695, %v716_v10 }
 0x3b1   :  { %v1158_v13 = vadd.f32 -1.0, %v1319_v12  ;;  %v1263_v12 = vld [vmem:[%s1645_s7] ss:$0 sm:$0xff]  ;;  %s1487_s7 = smov [#allocation11]  }
 0x3b2   :  { %1320 = vpow2.f32 %v744_v14  ;;  %s986_s9 = sshll.u32 %s1487_s7, 4  ;;  %s987_s9 = int_to_ptr.vmem [resolvable:$true] %s986_s9 }
 0x3b3   :  { %v680_v15 = vpop.f32.mrf.mxu3  ;;  %v779_v17 = vsel %vm699_vm11, %v676_v3, %v1158_v13 }
 0x3b4   :  { %v681_v18 = vadd.f32 %v1606_v34, %v680_v15  ;;  %v789_v19 = vpack.c.bf16 %v779_v17, %v778_v16 }
 0x3b6   :  { %v717_v20 = vmin.f32 %v681_v18, 0.0  ;;  %889 = vmatmul.bf16.gmra.mxu0 %v789_v19  ;;  %vm701_vm13 = vcmp.gt.f32.partialorder %v681_v18, 0.0 }
 0x3b8   :  { %v746_v21 = vmul.f32 1.442695, %v717_v20  ;;  %v1321_v23 = vpop.eup %1320 }
 0x3b9   :  { %v1159_v26 = vadd.f32 -1.0, %v1321_v23 }
 0x3ba   :  { %1322 = vpow2.f32 %v746_v21 }
 0x3bb   :  { %v683_v22 = vpop.f32.mrf.mxu3  ;;  %v780_v31 = vsel %vm700_vm12, %v679_v9, %v1159_v26 }
 0x3bc   :  { %v684_v24 = vadd.f32 %v1606_v34, %v683_v22 }
 0x3be   :  { %v718_v25 = vmin.f32 %v684_v24, 0.0  ;;  %vm702_vm14 = vcmp.gt.f32.partialorder %v684_v24, 0.0 }
 0x3c0   :  { %v1323_v27 = vpop.eup %1322  ;;  %v748_v29 = vmul.f32 1.442695, %v718_v25 }
 0x3c1   :  { %v1160_v28 = vadd.f32 -1.0, %v1323_v27 }
 0x3c2   :  { %1324 = vpow2.f32 %v748_v29 }
 0x3c3   :  { %v685_v30 = vpop.f32.mrf.mxu3  ;;  %v781_v32 = vsel %vm701_vm13, %v681_v18, %v1160_v28 }
 0x3c4   :  { %v686_v33 = vadd.f32 %v1606_v34, %v685_v30  ;;  %v790_v35 = vpack.c.bf16 %v781_v32, %v780_v31 }
 0x3c6   :  { %v719_v36 = vmin.f32 %v686_v33, 0.0  ;;  %894 = vmatmul.bf16.gmra.mxu0 %v790_v35  ;;  %vm703_vm15 = vcmp.gt.f32.partialorder %v686_v33, 0.0 }
 0x3c8   :  { %v750_v37 = vmul.f32 1.442695, %v719_v36  ;;  %v1325_v38 = vpop.eup %1324 }
 0x3c9   :  { %v1161_v39 = vadd.f32 -1.0, %v1325_v38 }
 0x3ca   :  { %1326 = vpow2.f32 %v750_v37 }
 0x3cb   :  { %v782_v50 = vsel %vm702_vm14, %v684_v24, %v1161_v39 }
 0x3d0   :  { %v1327_v44 = vpop.eup %1326 }
 0x3d1   :  { %v1162_v49 = vadd.f32 -1.0, %v1327_v44 }
 0x3d3   :  { %v783_v51 = vsel %vm703_vm15, %v686_v33, %v1162_v49 }
 0x3d4   :  { %v791_v52 = vpack.c.bf16 %v783_v51, %v782_v50 }
 0x3d6   :  { %899 = vmatmul.bf16.gmra.mxu0 %v791_v52 }
 0x3e3   :  { %v865_v53 = vpop.f32.mrf.mxu0 }
 0x3eb   :  { %v867_v54 = vpop.f32.mrf.mxu0 }
 0x3ec   :  { %v905_v55 = vpack.c.bf16 %v867_v54, %v865_v53 }
 0x3f3   :  { %v870_v34 = vpop.f32.mrf.mxu0 }
 0x3fb   :  { %v872_v57 = vpop.f32.mrf.mxu0 }
 0x3fc   :  { %v906_v58 = vpack.c.bf16 %v872_v57, %v870_v34 }
 0x403   :  { %v875_v59 = vpop.f32.mrf.mxu0 }
 0x40b   :  { %v877_v60 = vpop.f32.mrf.mxu0 }
 0x40c   :  { %v907_v61 = vpack.c.bf16 %v877_v60, %v875_v59 }
 0x413   :  { %v880_v62 = vpop.f32.mrf.mxu0 }
 0x41b   :  { %v882_v56 = vpop.f32.mrf.mxu0 }
 0x41c   :  { %v908_v63 = vpack.c.bf16 %v882_v56, %v880_v62 }
 0x423   :  { %v885_v0 = vpop.f32.mrf.mxu0 }
 0x42b   :  { %v887_v1 = vpop.f32.mrf.mxu0 }
 0x42c   :  { %v909_v11 = vpack.c.bf16 %v887_v1, %v885_v0 }
 0x433   :  { %v890_v2 = vpop.f32.mrf.mxu0 }
 0x43b   :  { %v892_v3 = vpop.f32.mrf.mxu0 }
 0x43c   :  { %v910_v10 = vpack.c.bf16 %v892_v3, %v890_v2 }
 0x443   :  { %v895_v4 = vpop.f32.mrf.mxu0 }
 0x44b   :  { %v897_v5 = vpop.f32.mrf.mxu0 }
 0x44c   :  { %v911_v9 = vpack.c.bf16 %v897_v5, %v895_v4 }
 0x453   :  { %v900_v6 = vpop.f32.mrf.mxu0 }
 0x45b   :  { %v902_v7 = vpop.f32.mrf.mxu0 }
 0x45c   :  { %v912_v8 = vpack.c.bf16 %v902_v7, %v900_v6 }
 0x45e   :  { %917 = vmatpush.bf16.msrb.mxu1 %v912_v8 }
 0x462   :  { %918 = vmatpush.bf16.msrb.mxu1 %v911_v9 }
 0x466   :  { %919 = vmatpush.bf16.msrb.mxu1 %v910_v10 }
 0x46a   :  { %920 = vmatpush.bf16.msrb.mxu1 %v909_v11 }
 0x46e   :  { %921 = vmatpush.bf16.msrb.mxu1 %v908_v63 }
 0x472   :  { %922 = vmatpush.bf16.msrb.mxu1 %v907_v61 }
 0x476   :  { %923 = vmatpush.bf16.msrb.mxu1 %v906_v58 }
 0x47a   :  { %924 = vmatpush.bf16.msrb.mxu1 %v905_v55 }
 0x47d   :  { %925 = vmatmul.bf16.vlgmr.msrb.gmra.mxu1 %v1550_v40 }
 0x48d   :  { %930 = vmatmul.bf16.gmra.mxu1 %v1556_v42 }
 0x49d   :  { %935 = vmatmul.bf16.gmra.mxu1 %v1562_v45 }
 0x4ad   :  { %940 = vmatmul.bf16.gmra.mxu1 %v1568_v47 }
 0x4bd   :  { %945 = vmatmul.bf16.gmra.mxu1 %v1553_v41 }
 0x4cd   :  { %950 = vmatmul.bf16.gmra.mxu1 %v1559_v43 }
 0x4dd   :  { %955 = vmatmul.bf16.gmra.mxu1 %v1564_v46 }
 0x4ed   :  { %960 = vmatmul.bf16.gmra.mxu1 %v1570_v48 }
 0x4fa   :  { %v926_v13 = vpop.f32.mrf.mxu1 }
 0x4fb   :  { %v927_v40 = vadd.f32 %v1263_v12, %v926_v13 }
 0x4fd   :  { %966 = vst [vmem:[#allocation11] sm:$0xff] %v927_v40 }
 0x502   :  { %v928_v42 = vpop.f32.mrf.mxu1 }
 0x503   :  { %v929_v14 = vadd.f32 %v1263_v12, %v928_v42 }
 0x505   :  { %967 = vst [vmem:[#allocation11 + $0x8] sm:$0xff] %v929_v14 }
 0x50a   :  { %v931_v45 = vpop.f32.mrf.mxu1 }
 0x50b   :  { %v932_v47 = vadd.f32 %v1263_v12, %v931_v45 }
 0x50d   :  { %968 = vst [vmem:[#allocation11 + $0x10] sm:$0xff] %v932_v47 }
 0x512   :  { %v933_v41 = vpop.f32.mrf.mxu1 }
 0x513   :  { %v934_v15 = vadd.f32 %v1263_v12, %v933_v41 }
 0x515   :  { %969 = vst [vmem:[#allocation11 + $0x18] sm:$0xff] %v934_v15 }
 0x51a   :  { %v936_v43 = vpop.f32.mrf.mxu1 }
 0x51b   :  { %v937_v46 = vadd.f32 %v1263_v12, %v936_v43 }
 0x51d   :  { %970 = vst [vmem:[#allocation11 + $0x20] sm:$0xff] %v937_v46 }
 0x522   :  { %v938_v48 = vpop.f32.mrf.mxu1 }
 0x523   :  { %v939_v16 = vadd.f32 %v1263_v12, %v938_v48 }
 0x525   :  { %971 = vst [vmem:[#allocation11 + $0x28] sm:$0xff] %v939_v16 }
 0x52a   :  { %v941_v17 = vpop.f32.mrf.mxu1 }
 0x52b   :  { %v942_v18 = vadd.f32 %v1263_v12, %v941_v17 }
 0x52d   :  { %972 = vst [vmem:[#allocation11 + $0x30] sm:$0xff] %v942_v18 }
 0x532   :  { %v943_v19 = vpop.f32.mrf.mxu1 }
 0x533   :  { %v944_v20 = vadd.f32 %v1263_v12, %v943_v19 }
 0x535   :  { %973 = vst [vmem:[#allocation11 + $0x38] sm:$0xff] %v944_v20 }
 0x53a   :  { %v946_v21 = vpop.f32.mrf.mxu1 }
 0x53b   :  { %v947_v22 = vadd.f32 %v1263_v12, %v946_v21 }
 0x53d   :  { %974 = vst [vmem:[#allocation11 + $0x40] sm:$0xff] %v947_v22 }
 0x542   :  { %v948_v23 = vpop.f32.mrf.mxu1 }
 0x543   :  { %v949_v24 = vadd.f32 %v1263_v12, %v948_v23 }
 0x545   :  { %975 = vst [vmem:[#allocation11 + $0x48] sm:$0xff] %v949_v24 }
 0x54a   :  { %v951_v25 = vpop.f32.mrf.mxu1 }
 0x54b   :  { %v952_v26 = vadd.f32 %v1263_v12, %v951_v25 }
 0x54d   :  { %976 = vst [vmem:[#allocation11 + $0x50] sm:$0xff] %v952_v26 }
 0x552   :  { %v953_v27 = vpop.f32.mrf.mxu1 }
 0x553   :  { %v954_v28 = vadd.f32 %v1263_v12, %v953_v27 }
 0x555   :  { %977 = vst [vmem:[#allocation11 + $0x58] sm:$0xff] %v954_v28 }
 0x55a   :  { %v956_v29 = vpop.f32.mrf.mxu1 }
 0x55b   :  { %v957_v30 = vadd.f32 %v1263_v12, %v956_v29 }
 0x55d   :  { %978 = vst [vmem:[#allocation11 + $0x60] sm:$0xff] %v957_v30 }
 0x562   :  { %v958_v31 = vpop.f32.mrf.mxu1 }
 0x563   :  { %v959_v32 = vadd.f32 %v1263_v12, %v958_v31 }
 0x565   :  { %979 = vst [vmem:[#allocation11 + $0x68] sm:$0xff] %v959_v32 }
 0x56a   :  { %v961_v33 = vpop.f32.mrf.mxu1 }
 0x56b   :  { %v962_v35 = vadd.f32 %v1263_v12, %v961_v33 }
 0x56d   :  { %980 = vst [vmem:[#allocation11 + $0x70] sm:$0xff] %v962_v35 }
 0x572   :  { %v963_v36 = vpop.f32.mrf.mxu1 }
 0x573   :  { %v964_v37 = vadd.f32 %v1263_v12, %v963_v36 }
 0x575   :  { %981 = vst [vmem:[#allocation11 + $0x78] sm:$0xff] %v964_v37 }
 0x576   :  { %994 = dma.vmem_to_hbm [thread:$0]  %s987_s9, 2048, %s989_s12, [#allocation4], %s1488_s13, %s1488_s13, %s1489_s14  }
 0x577   :  { %1478 = dma.done.wait [#allocation4], 2048  }
 0x578   :  { %1479 = vsyncadd [#allocation4], 4294965248 }
 0x579   :  { %999 = vsyncpa [#allocation3], 1 }
 0x57a   :  { %1000 = vsyncpa [#allocation6], 1 }
 0x57b   :  { %1001 = vsyncpa [#allocation9], 1 }
 0x57c   :  { %1002 = vsyncpa [#allocation4], 1 }

</bundles_post_ra>
